<compile_context>
chip_gen: v7x
topology: tpu7x:2x2x1
jax: 0.10.0
libtpu: 0.0.40
codegen_flags: <defaults>
</compile_context>

<pallas_src>
import numpy as np
import jax
import jax.numpy as jnp
from jax.experimental import pallas as pl
from jax.experimental.pallas import tpu as pltpu


def _round_up(x, m):
    return ((x + m - 1) // m) * m


def _vmem_capacity_bytes():
    """Per-TensorCore VMEM capacity; falls back to the v7x (smallest) value."""
    try:
        cap = int(pltpu.get_tpu_info().vmem_capacity_bytes)
        if cap > 0:
            return cap
    except Exception:
        pass
    return 64 * 1024 * 1024


# ----------------------------------------------------------------------------
# Kernel: grid = (batch tiles, K tiles); f32 accumulator scratch across K.
# ----------------------------------------------------------------------------
def _textcnn_kernel(x_ref, w_ref, b_ref, dec_w_ref, dec_b_ref, out_ref, acc_ref):
    k = pl.program_id(1)

    @pl.when(k == 0)
    def _init():
        acc_ref[...] = jnp.zeros_like(acc_ref)

    # Fused conv + AdaptiveAvgPool1d(1), all branches: one MXU matmul chunk
    # over the K = L*Cin contraction (f32 accumulation).
    acc_ref[...] += jnp.dot(x_ref[...], w_ref[...],
                            preferred_element_type=jnp.float32)

    @pl.when(k == pl.num_programs(1) - 1)
    def _finalize():
        enc = jnp.maximum(acc_ref[...] + b_ref[...], 0.0)   # ReLU after pool
        # TODO(synk): nn.Dropout(0.5) is identity in eval mode; not applied.
        logits = jnp.dot(enc.astype(dec_w_ref.dtype), dec_w_ref[...],
                         preferred_element_type=jnp.float32) + dec_b_ref[...]
        out_ref[...] = logits.astype(out_ref.dtype)


# ----------------------------------------------------------------------------
# One-time weight preparation (hoisted out of the per-call forward).
# ----------------------------------------------------------------------------
def _fold_conv_pool(conv_w, conv_b, seq_len):
    """Fold Conv1d + AdaptiveAvgPool1d(1) of every branch into one linear map.

    Valid because the mean-pool is applied before the ReLU, so
    mean_t(conv1d(x)) is linear in x.  Returns W_eff (L*Cin, sum_C) matching x
    flattened from the (B, L, Cin) layout (no NCL transpose) and the
    concatenated conv biases (1, sum_C).
    """
    blocks = []
    for w in conv_w:
        c_out, _, k = w.shape
        lout = seq_len - k + 1
        l_idx = jnp.arange(seq_len)[:, None]                  # (L, 1)
        j_idx = jnp.arange(k)[None, :]                        # (1, K)
        valid = ((l_idx - j_idx >= 0) & (l_idx - j_idx < lout)).astype(w.dtype)
        # A[l, i, c] = (1/Lout) * sum_j W[c, i, j] * [0 <= l - j < Lout]
        a = jnp.einsum("lj,cij->lic", valid, w) / lout        # (L, Cin, C)
        blocks.append(a.reshape(-1, c_out))                   # (L*Cin, C)
    w_eff = jnp.concatenate(blocks, axis=1)                   # (L*Cin, sum_C)
    b_all = jnp.concatenate(conv_b, axis=0)[None, :]          # (1, sum_C)
    return w_eff, b_all


def prepare_textcnn_params(params, seq_len, num_channels,
                           compute_dtype=jnp.bfloat16):
    """Fold + pad weights once per parameter set (call outside the hot loop)."""
    w_eff, b_all = _fold_conv_pool(params["conv_w"], params["conv_b"], seq_len)
    sum_c = int(sum(num_channels))
    n_out = params["dec_w"].shape[0]
    # 128 = one full MXU pass on v5e; above 128, round to 256 so v6e/v7x's
    # 256-wide MXU runs full-width passes instead of 2x half-width.
    c_pad = 128 if sum_c <= 128 else _round_up(sum_c, 256)
    out_pad = 128
    lc = w_eff.shape[0]

    w_eff_p = jnp.zeros((lc, c_pad), compute_dtype).at[:, :sum_c].set(
        w_eff.astype(compute_dtype))
    b_all_p = jnp.zeros((1, c_pad), jnp.float32).at[:, :sum_c].set(
        b_all.astype(jnp.float32))
    dec_w_p = jnp.zeros((c_pad, out_pad), compute_dtype).at[:sum_c, :n_out].set(
        params["dec_w"].T.astype(compute_dtype))
    dec_b_p = jnp.zeros((1, out_pad), jnp.float32).at[:, :n_out].set(
        params["dec_b"][None, :].astype(jnp.float32))

    return {
        # Cast tables once so the gather+concat produce the compute dtype.
        "embedding": params["embedding"].astype(compute_dtype),
        "constant_embedding": params["constant_embedding"].astype(compute_dtype),
        "w_eff": w_eff_p, "b_all": b_all_p,
        "dec_w": dec_w_p, "dec_b": dec_b_p,
    }


# ----------------------------------------------------------------------------
# Forward
# ----------------------------------------------------------------------------
def textcnn_forward(tokens, prepared, num_classes=2):
    emb_a = prepared["embedding"]
    emb_b = prepared["constant_embedding"]
    w_eff = prepared["w_eff"]           # (LC, C_PAD)  compute dtype
    b_all = prepared["b_all"]           # (1, C_PAD)   f32
    dec_w = prepared["dec_w"]           # (C_PAD, 128) compute dtype
    dec_b = prepared["dec_b"]           # (1, 128)     f32

    compute_dtype = w_eff.dtype
    itemsize = jnp.dtype(compute_dtype).itemsize
    sub = 16 if itemsize < 4 else 8      # bf16 native (16,128) packing

    B, L = tokens.shape
    cin = emb_a.shape[1] + emb_b.shape[1]
    LC = L * cin
    c_pad = w_eff.shape[1]
    out_pad = dec_w.shape[1]
    assert w_eff.shape[0] == LC, (w_eff.shape, LC)

    cap = _vmem_capacity_bytes()
    budget = int(0.60 * cap)             # per-generation headroom

    # VMEM cost model: 2 buffers per auto-pipelined input/output (Pallas
    # double-buffers by default), plus accumulator scratch / intermediates.
    def _fixed(tk):                      # grid-invariant / K-streamed operands
        return (2 * tk * c_pad * itemsize          # W_eff K-slab
                + 2 * c_pad * out_pad * itemsize   # decoder weight
                + 2 * (c_pad + out_pad) * 4)       # biases (f32)

    def _per_row(tk):                    # bytes per batch row
        return (2 * tk * itemsize                  # x K-slab
                + 2 * out_pad * 4                  # output tile (f32)
                + c_pad * 4                        # f32 accumulator scratch
                + 2 * c_pad * 4)                   # enc/logits headroom

    # K (contraction) tile: full LC when it fits; otherwise stream 128-multiple
    # K blocks so the resident W_eff slab stays under v7x's 64 MiB VMEM.
    tk = LC
    if _fixed(tk) + sub * _per_row(tk) > budget:
        tk = 128
        while (2 * tk <= 4096 and 2 * tk < LC
               and _fixed(2 * tk) + sub * _per_row(2 * tk) <= budget):
            tk *= 2

    # Batch tile: largest that fits (amortizes ~0.35us/grid-step), sublane-pack
    # aligned, capped at 2048 rows.
    tb = (budget - _fixed(tk)) // _per_row(tk)
    tb = max(sub, min(2048, (tb // sub) * sub, _round_up(B, sub)))
    # Guarantee >=2 grid steps on the "parallel" batch axis when the batch is
    # big enough, so both v7x TensorCores (megacore) get work.
    if _round_up(B, tb) == tb and B > sub:
        tb = max(sub, _round_up((B + 1) // 2, sub))

    b_pad = _round_up(B, tb)
    lc_pad = LC if tk == LC else _round_up(LC, tk)

    # Glue (outside the kernel): pad TOKENS (cheap int32) rather than the
    # activation tensor; gather both embedding tables (already in the compute
    # dtype) and flatten (L, Cin) -> LC contiguously (no NCL transpose).
    # TODO(synk): fuse this gather into the kernel (scalar-prefetched tokens)
    # to remove the remaining HBM round-trip over x_flat.
    if b_pad != B:
        tokens = jnp.pad(tokens, ((0, b_pad - B), (0, 0)))
    emb = jnp.concatenate([emb_a[tokens], emb_b[tokens]], axis=2)  # (Bp,L,Cin)
    x_flat = emb.reshape(b_pad, LC)
    if lc_pad != LC:
        # Rare long-sequence path; zero K-padding is a matmul no-op.
        # TODO(synk): fold this pad into prepare_textcnn_params or switch to
        # the window-means formulation so W_eff stops scaling with L.
        x_flat = jnp.pad(x_flat, ((0, 0), (0, lc_pad - LC)))
        w_eff = jnp.pad(w_eff, ((0, lc_pad - LC), (0, 0)))

    grid = (b_pad // tb, lc_pad // tk)

    est = _fixed(tk) + tb * _per_row(tk)
    vmem_limit = int(min(max(1.35 * est, 16 * 1024 * 1024), 0.75 * cap))

    cost = pl.CostEstimate(
        flops=2 * b_pad * lc_pad * c_pad + 2 * b_pad * c_pad * out_pad,
        transcendentals=0,
        bytes_accessed=(x_flat.size * itemsize + w_eff.size * itemsize
                        + dec_w.size * itemsize + b_all.size * 4
                        + dec_b.size * 4 + b_pad * out_pad * 4))

    out = pl.pallas_call(
        _textcnn_kernel,
        out_shape=jax.ShapeDtypeStruct((b_pad, out_pad), jnp.float32),
        grid=grid,
        in_specs=[
            pl.BlockSpec((tb, tk), lambda i, k: (i, k)),          # activations
            pl.BlockSpec((tk, c_pad), lambda i, k: (k, 0)),       # folded conv W
            pl.BlockSpec((1, c_pad), lambda i, k: (0, 0)),        # conv biases
            pl.BlockSpec((c_pad, out_pad), lambda i, k: (0, 0)),  # decoder W
            pl.BlockSpec((1, out_pad), lambda i, k: (0, 0)),      # decoder bias
        ],
        out_specs=pl.BlockSpec((tb, out_pad), lambda i, k: (i, 0)),
        scratch_shapes=[pltpu.VMEM((tb, c_pad), jnp.float32)],
        compiler_params=pltpu.CompilerParams(
            dimension_semantics=("parallel", "arbitrary"),
            vmem_limit_bytes=vmem_limit),
        cost_estimate=cost,
    )(x_flat, w_eff, b_all, dec_w, dec_b)

    return out[:B, :num_classes]


# ----------------------------------------------------------------------------
# Parameter init + pure-JAX reference (PyTorch-eval semantics, f32)
# ----------------------------------------------------------------------------
def init_params(key, vocab_size, embed_size, kernel_sizes, num_channels):
    nb = len(kernel_sizes)
    keys = jax.random.split(key, 4 + 2 * nb)
    p = {}
    # nn.Embedding default init: N(0, 1)
    p["embedding"] = jax.random.normal(keys[0], (vocab_size, embed_size), jnp.float32)
    p["constant_embedding"] = jax.random.normal(keys[1], (vocab_size, embed_size), jnp.float32)
    cin = 2 * embed_size
    conv_w, conv_b = [], []
    for i, (c, k) in enumerate(zip(num_channels, kernel_sizes)):
        bound = 1.0 / np.sqrt(cin * k)
        conv_w.append(jax.random.uniform(keys[2 + 2 * i], (c, cin, k),
                                         jnp.float32, -bound, bound))
        conv_b.append(jax.random.uniform(keys[3 + 2 * i], (c,),
                                         jnp.float32, -bound, bound))
    p["conv_w"], p["conv_b"] = conv_w, conv_b
    bound = 1.0 / np.sqrt(sum(num_channels))
    p["dec_w"] = jax.random.uniform(keys[2 + 2 * nb], (2, sum(num_channels)),
                                    jnp.float32, -bound, bound)
    p["dec_b"] = jax.random.uniform(keys[3 + 2 * nb], (2,),
                                    jnp.float32, -bound, bound)
    return p


def reference_forward(tokens, params):
    e = jnp.concatenate([params["embedding"][tokens],
                         params["constant_embedding"][tokens]], axis=2)
    x = jnp.transpose(e, (0, 2, 1))
    outs = []
    for w, b in zip(params["conv_w"], params["conv_b"]):
        conv = jax.lax.conv_general_dilated(
            x, w, (1,), "VALID", dimension_numbers=("NCH", "OIH", "NCH"))
        conv = conv + b[None, :, None]
        pooled = jnp.mean(conv, axis=-1)              # AdaptiveAvgPool1d(1)+squeeze
        outs.append(jax.nn.relu(pooled))              # ReLU after the pool
    enc = jnp.concatenate(outs, axis=1)
    return enc @ params["dec_w"].T + params["dec_b"]


if __name__ == "__main__":
    vocab_size, embed_size = 50, 16
    kernel_sizes, num_channels = (3, 4, 5), (8, 8, 8)
    batch, seq = 2, 16

    key = jax.random.PRNGKey(0)
    pkey, tkey = jax.random.split(key)
    params = init_params(pkey, vocab_size, embed_size, kernel_sizes, num_channels)
    tokens = jax.random.randint(tkey, (batch, seq), 0, vocab_size, dtype=jnp.int32)

    ref = reference_forward(tokens, params)

    fwd = jax.jit(textcnn_forward)

    # Default path: bf16 MXU inputs, f32 accumulation. bf16 mantissa (~2^-9)
    # dominates the error budget -> loosened tolerance.
    prep_bf16 = prepare_textcnn_params(params, seq, num_channels, jnp.bfloat16)
    out_bf16 = jax.block_until_ready(fwd(tokens, prep_bf16))
    assert out_bf16.shape == (batch, 2), out_bf16.shape
    assert jnp.allclose(out_bf16, ref, atol=3e-2, rtol=3e-2), (out_bf16, ref)

    # f32 path for tighter numerical parity with the reference.
    prep_f32 = prepare_textcnn_params(params, seq, num_channels, jnp.float32)
    out_f32 = jax.block_until_ready(fwd(tokens, prep_f32))
    assert out_f32.shape == (batch, 2), out_f32.shape
    assert jnp.allclose(out_f32, ref, atol=5e-3, rtol=5e-3), (out_f32, ref)

    print("KERNEL_OK")
</pallas_src>

<mosaic_0001>
module attributes {stable_mosaic.version = 11 : i64} {
  func.func @_textcnn_kernel(%arg0: i32, %arg1: i32, %arg2: memref<16x512xbf16, #tpu.memory_space<vmem>>, %arg3: memref<512x128xbf16, #tpu.memory_space<vmem>>, %arg4: memref<1x128xf32, #tpu.memory_space<vmem>>, %arg5: memref<128x128xbf16, #tpu.memory_space<vmem>>, %arg6: memref<1x128xf32, #tpu.memory_space<vmem>>, %arg7: memref<16x128xf32, #tpu.memory_space<vmem>>, %arg8: memref<16x128xf32, #tpu.memory_space<vmem>>) attributes {dimension_semantics = [#tpu.dimension_semantics<parallel>, #tpu.dimension_semantics<arbitrary>], iteration_bounds = array<i64: 1, 1>, scalar_prefetch = 0 : i64, scratch_operands = 1 : i64, tpu.core_type = #tpu.core_type<tc>, window_params = [{transform_indices = @transform_0, window_bounds = array<i64: 16, 512>}, {transform_indices = @transform_1, window_bounds = array<i64: 512, 128>}, {pipeline_mode = #tpu.pipeline_mode<synchronous>, transform_indices = @transform_2, window_bounds = array<i64: 1, 128>}, {pipeline_mode = #tpu.pipeline_mode<synchronous>, transform_indices = @transform_3, window_bounds = array<i64: 128, 128>}, {pipeline_mode = #tpu.pipeline_mode<synchronous>, transform_indices = @transform_4, window_bounds = array<i64: 1, 128>}, {transform_indices = @transform_5, window_bounds = array<i64: 16, 128>}]} {
    %c0_i32 = arith.constant 0 : i32
    %0 = arith.cmpi eq, %arg1, %c0_i32 : i32
    %1 = arith.extui %0 : i1 to i32
    %c0_i32_0 = arith.constant 0 : i32
    %2 = arith.cmpi ne, %1, %c0_i32_0 : i32
    scf.if %2 {
      %cst_10 = arith.constant 0.000000e+00 : f32
      %12 = vector.broadcast %cst_10 : f32 to vector<16x128xf32>
      %c0_11 = arith.constant 0 : index
      %c0_12 = arith.constant 0 : index
      %13 = vector.load %arg8[%c0_11, %c0_12] : memref<16x128xf32, #tpu.memory_space<vmem>>, vector<16x128xf32>
      tpu.vector_store %arg8[%c0_11, %c0_12], %12 {strides = array<i32>} : memref<16x128xf32, #tpu.memory_space<vmem>>, vector<16x128xf32>,
    } else {
    }
    %c0 = arith.constant 0 : index
    %c0_1 = arith.constant 0 : index
    %3 = vector.load %arg8[%c0, %c0_1] : memref<16x128xf32, #tpu.memory_space<vmem>>, vector<16x128xf32>
    %c0_2 = arith.constant 0 : index
    %c0_3 = arith.constant 0 : index
    %4 = vector.load %arg2[%c0_2, %c0_3] : memref<16x512xbf16, #tpu.memory_space<vmem>>, vector<16x512xbf16>
    %c0_4 = arith.constant 0 : index
    %c0_5 = arith.constant 0 : index
    %5 = vector.load %arg3[%c0_4, %c0_5] : memref<512x128xbf16, #tpu.memory_space<vmem>>, vector<512x128xbf16>
    %cst = arith.constant dense<0.000000e+00> : vector<16x128xf32>
    %6 = tpu.matmul %4, %5, %cst {dimension_numbers = #tpu.dot_dimension_numbers<[1], [0], [0], [1], [0, 0, 1, 1], [], []>} : vector<16x512xbf16>, vector<512x128xbf16>, vector<16x128xf32> -> vector<16x128xf32>
    %7 = arith.addf %3, %6 : vector<16x128xf32>
    %c0_6 = arith.constant 0 : index
    %c0_7 = arith.constant 0 : index
    %8 = vector.load %arg8[%c0_6, %c0_7] : memref<16x128xf32, #tpu.memory_space<vmem>>, vector<16x128xf32>
    tpu.vector_store %arg8[%c0_6, %c0_7], %7 {strides = array<i32>} : memref<16x128xf32, #tpu.memory_space<vmem>>, vector<16x128xf32>,
    %c0_i32_8 = arith.constant 0 : i32
    %9 = arith.cmpi eq, %arg1, %c0_i32_8 : i32
    %10 = arith.extui %9 : i1 to i32
    %c0_i32_9 = arith.constant 0 : i32
    %11 = arith.cmpi ne, %10, %c0_i32_9 : i32
    scf.if %11 {
      %c0_10 = arith.constant 0 : index
      %c0_11 = arith.constant 0 : index
      %12 = vector.load %arg8[%c0_10, %c0_11] : memref<16x128xf32, #tpu.memory_space<vmem>>, vector<16x128xf32>
      %c0_12 = arith.constant 0 : index
      %c0_13 = arith.constant 0 : index
      %13 = vector.load %arg4[%c0_12, %c0_13] : memref<1x128xf32, #tpu.memory_space<vmem>>, vector<1x128xf32>
      %14 = vector.broadcast %13 : vector<1x128xf32> to vector<16x128xf32>
      %15 = arith.addf %12, %14 : vector<16x128xf32>
      %cst_14 = arith.constant 0.000000e+00 : f32
      %16 = vector.broadcast %cst_14 : f32 to vector<16x128xf32>
      %17 = arith.maximumf %15, %16 : vector<16x128xf32>
      %18 = arith.truncf %17 : vector<16x128xf32> to vector<16x128xbf16>
      %c0_15 = arith.constant 0 : index
      %c0_16 = arith.constant 0 : index
      %19 = vector.load %arg5[%c0_15, %c0_16] : memref<128x128xbf16, #tpu.memory_space<vmem>>, vector<128x128xbf16>
      %cst_17 = arith.constant dense<0.000000e+00> : vector<16x128xf32>
      %20 = tpu.matmul %18, %19, %cst_17 {dimension_numbers = #tpu.dot_dimension_numbers<[1], [0], [0], [1], [0, 0, 1, 1], [], []>} : vector<16x128xbf16>, vector<128x128xbf16>, vector<16x128xf32> -> vector<16x128xf32>
      %c0_18 = arith.constant 0 : index
      %c0_19 = arith.constant 0 : index
      %21 = vector.load %arg6[%c0_18, %c0_19] : memref<1x128xf32, #tpu.memory_space<vmem>>, vector<1x128xf32>
      %22 = vector.broadcast %21 : vector<1x128xf32> to vector<16x128xf32>
      %23 = arith.addf %20, %22 : vector<16x128xf32>
      %c0_20 = arith.constant 0 : index
      %c0_21 = arith.constant 0 : index
      %24 = vector.load %arg7[%c0_20, %c0_21] : memref<16x128xf32, #tpu.memory_space<vmem>>, vector<16x128xf32>
      tpu.vector_store %arg7[%c0_20, %c0_21], %23 {strides = array<i32>} : memref<16x128xf32, #tpu.memory_space<vmem>>, vector<16x128xf32>,
    } else {
    }
    return
  }
  func.func @transform_0(%arg0: i32, %arg1: i32) -> (i32, i32) {
    %c0_i32 = arith.constant 0 : i32
    return %arg0, %arg1 : i32, i32
  }
  func.func @transform_1(%arg0: i32, %arg1: i32) -> (i32, i32) {
    %c0_i32 = arith.constant 0 : i32
    %c0_i32_0 = arith.constant 0 : i32
    return %arg1, %c0_i32 : i32, i32
  }
  func.func @transform_2(%arg0: i32, %arg1: i32) -> (i32, i32) {
    %c0_i32 = arith.constant 0 : i32
    %c0_i32_0 = arith.constant 0 : i32
    %c0_i32_1 = arith.constant 0 : i32
    return %c0_i32, %c0_i32_0 : i32, i32
  }
  func.func @transform_3(%arg0: i32, %arg1: i32) -> (i32, i32) {
    %c0_i32 = arith.constant 0 : i32
    %c0_i32_0 = arith.constant 0 : i32
    %c0_i32_1 = arith.constant 0 : i32
    return %c0_i32, %c0_i32_0 : i32, i32
  }
  func.func @transform_4(%arg0: i32, %arg1: i32) -> (i32, i32) {
    %c0_i32 = arith.constant 0 : i32
    %c0_i32_0 = arith.constant 0 : i32
    %c0_i32_1 = arith.constant 0 : i32
    return %c0_i32, %c0_i32_0 : i32, i32
  }
  func.func @transform_5(%arg0: i32, %arg1: i32) -> (i32, i32) {
    %c0_i32 = arith.constant 0 : i32
    %c0_i32_0 = arith.constant 0 : i32
    return %arg0, %c0_i32 : i32, i32
  }
}

</mosaic_0001>

<bundles_post_ra>
// kernel: textcnn_forward.1
= control target key start
LH: loop header
LB: loop body
LE: loop exit
PB: predicated region body
PF: predicated region fallthrough
CT: control target
= control target key end

     0   :  { %v697_v34 = vmov 0.0   ;;  %vm698_vm0 = vmmov 0   ;;  %s873_s1 = inlined_call_operand.vmem [shape: bf16[512,128], index: 1, kind: input, shape index: {}]   ;;  %s874_s0 = inlined_call_operand.vmem [shape: bf16[16,512], index: 0, kind: input, shape index: {}]   ;;  %s875_s3 = inlined_call_operand.vmem [shape: bf16[128,128], index: 3, kind: input, shape index: {}]   ;;  %s876_s2 = inlined_call_operand.vmem [shape: f32[1,128], index: 2, kind: input, shape index: {}]   ;;  %s877_s4 = inlined_call_operand.vmem [shape: f32[1,128], index: 4, kind: input, shape index: {}]   ;;  %s878_s5 = inlined_call_operand.vmem [shape: f32[16,128], index: 5, kind: output, shape index: {}]  }
   0x1   :  { %v651_v0 = vld [vmem:[%s873_s1 + $0x40] sm:$0xff]   ;;  %v655_v4 = vld [vmem:[%s873_s1 + $0x48] sm:$0xff]   ;;  %v659_v8 = vld [vmem:[%s873_s1 + $0x50] sm:$0xff]  }
   0x2   :  { %v652_v1 = vld [vmem:[%s873_s1 + $0xc0] sm:$0xff]   ;;  %576 = vmatprep.subr.bf16.mxu0 %v651_v0  ;;  %v656_v5 = vld [vmem:[%s873_s1 + $0xc8] sm:$0xff]   ;;  %v660_v9 = vld [vmem:[%s873_s1 + $0xd0] sm:$0xff]  }
   0x3   :  { %v653_v2 = vld [vmem:[%s873_s1] sm:$0xff]   ;;  %598 = vmatprep.subr.bf16.mxu1 %v652_v1  ;;  %v657_v6 = vld [vmem:[%s873_s1 + $0x8] sm:$0xff]   ;;  %v661_v10 = vld [vmem:[%s873_s1 + $0x10] sm:$0xff]  }
   0x4   :  { %v654_v3 = vld [vmem:[%s873_s1 + $0x80] sm:$0xff]   ;;  %577 = vmatpush3.bf16.msra.mxu0 %v653_v2  ;;  %v658_v7 = vld [vmem:[%s873_s1 + $0x88] sm:$0xff]   ;;  %v662_v11 = vld [vmem:[%s873_s1 + $0x90] sm:$0xff]  }
   0x5   :  { %599 = vmatpush3.bf16.msra.mxu1 %v654_v3  ;;  %578 = vmatprep.subr.bf16.mxu0 %v655_v4  ;;  %v663_v12 = vld [vmem:[%s873_s1 + $0x58] sm:$0xff]   ;;  %v667_v16 = vld [vmem:[%s873_s1 + $0x60] sm:$0xff]   ;;  %v671_v20 = vld [vmem:[%s873_s1 + $0x68] sm:$0xff]  }
   0x6   :  { %600 = vmatprep.subr.bf16.mxu1 %v656_v5  ;;  %v664_v13 = vld [vmem:[%s873_s1 + $0xd8] sm:$0xff]   ;;  %v668_v17 = vld [vmem:[%s873_s1 + $0xe0] sm:$0xff]   ;;  %v672_v21 = vld [vmem:[%s873_s1 + $0xe8] sm:$0xff]  }
   0x7   :  { %v665_v14 = vld [vmem:[%s873_s1 + $0x18] sm:$0xff]   ;;  %v669_v18 = vld [vmem:[%s873_s1 + $0x20] sm:$0xff]   ;;  %v673_v22 = vld [vmem:[%s873_s1 + $0x28] sm:$0xff]  }
   0x8   :  { %579 = vmatpush3.bf16.msra.mxu0 %v657_v6  ;;  %v666_v15 = vld [vmem:[%s873_s1 + $0x98] sm:$0xff]   ;;  %v670_v19 = vld [vmem:[%s873_s1 + $0xa0] sm:$0xff]   ;;  %v674_v23 = vld [vmem:[%s873_s1 + $0xa8] sm:$0xff]  }
   0x9   :  { %601 = vmatpush3.bf16.msra.mxu1 %v658_v7  ;;  %580 = vmatprep.subr.bf16.mxu0 %v659_v8  ;;  %v675_v24 = vld [vmem:[%s873_s1 + $0x70] sm:$0xff]   ;;  %v679_v28 = vld [vmem:[%s873_s1 + $0x78] sm:$0xff]   ;;  %v689_v37 = vld [vmem:[%s875_s3] sm:$0xff]  }
   0xa   :  { %602 = vmatprep.subr.bf16.mxu1 %v660_v9  ;;  %v676_v25 = vld [vmem:[%s873_s1 + $0xf0] sm:$0xff]   ;;  %v680_v29 = vld [vmem:[%s873_s1 + $0xf8] sm:$0xff]   ;;  %v690_v38 = vld [vmem:[%s875_s3 + $0x8] sm:$0xff]  }
   0xb   :  { %v677_v26 = vld [vmem:[%s873_s1 + $0x30] sm:$0xff]   ;;  %v681_v30 = vld [vmem:[%s873_s1 + $0x38] sm:$0xff]   ;;  %v693_v41 = vld [vmem:[%s875_s3 + $0x20] sm:$0xff]  }
   0xc   :  { %581 = vmatpush3.bf16.msra.mxu0 %v661_v10  ;;  %v678_v27 = vld [vmem:[%s873_s1 + $0xb0] sm:$0xff]   ;;  %v682_v31 = vld [vmem:[%s873_s1 + $0xb8] sm:$0xff]   ;;  %v694_v42 = vld [vmem:[%s875_s3 + $0x28] sm:$0xff]  }
   0xd   :  { %603 = vmatpush3.bf16.msra.mxu1 %v662_v11  ;;  %582 = vmatprep.subr.bf16.mxu0 %v663_v12  ;;  %v683_v32 = vld [vmem:[%s874_s0] ss:$16 sps:$4 sm:$0xff]   ;;  %v685_v33 = vld [vmem:[%s874_s0 + $0x4] ss:$16 sps:$4 sm:$0xff]   ;;  %v686_v35 = vld [vmem:[%s874_s0 + $0x8] ss:$16 sps:$4 sm:$0xff]  }
   0xe   :  { %604 = vmatprep.subr.bf16.mxu1 %v664_v13  ;;  %v688_v36 = vld [vmem:[%s874_s0 + $0xc] ss:$16 sps:$4 sm:$0xff]   ;;  %341 = vmatprep.mubr.bf16.mxu0 %v685_v33  ;;  %v691_v39 = vld [vmem:[%s875_s3 + $0x10] sm:$0xff]   ;;  %v566_v54 = vld [vmem:[%s876_s2] ss:$0 sm:$0xff] }
   0xf   :  { %382 = vmatprep.mubr.bf16.mxu1 %v688_v36  ;;  %v692_v40 = vld [vmem:[%s875_s3 + $0x18] sm:$0xff]   ;;  %v695_v43 = vld [vmem:[%s875_s3 + $0x30] sm:$0xff]   ;;  %v567_v1 = vld [vmem:[%s877_s4] ss:$0 sm:$0xff] }
  0x10   :  { %583 = vmatpush3.bf16.msra.mxu0 %v665_v14  ;;  %v696_v44 = vld [vmem:[%s875_s3 + $0x38] sm:$0xff]  }
  0x11   :  { %605 = vmatpush3.bf16.msra.mxu1 %v666_v15  ;;  %584 = vmatprep.subr.bf16.mxu0 %v667_v16 }
  0x12   :  { %606 = vmatprep.subr.bf16.mxu1 %v668_v17 }
  0x14   :  { %585 = vmatpush3.bf16.msra.mxu0 %v669_v18 }
  0x15   :  { %607 = vmatpush3.bf16.msra.mxu1 %v670_v19  ;;  %586 = vmatprep.subr.bf16.mxu0 %v671_v20 }
  0x16   :  { %608 = vmatprep.subr.bf16.mxu1 %v672_v21 }
  0x18   :  { %587 = vmatpush3.bf16.msra.mxu0 %v673_v22 }
  0x19   :  { %609 = vmatpush3.bf16.msra.mxu1 %v674_v23  ;;  %588 = vmatprep.subr.bf16.mxu0 %v675_v24 }
  0x1a   :  { %610 = vmatprep.subr.bf16.mxu1 %v676_v25 }
  0x1c   :  { %589 = vmatpush3.bf16.msra.mxu0 %v677_v26 }
  0x1d   :  { %611 = vmatpush3.bf16.msra.mxu1 %v678_v27  ;;  %590 = vmatprep.subr.bf16.mxu0 %v679_v28 }
  0x1e   :  { %612 = vmatprep.subr.bf16.mxu1 %v680_v29 }
  0x20   :  { %591 = vmatpush3.bf16.msra.mxu0 %v681_v30 }
  0x21   :  { %613 = vmatpush3.bf16.msra.mxu1 %v682_v31  ;;  %629 = vmatprep.subr.bf16.mxu0 %v697_v34 }
  0x23   :  { %342 = vmatmul.mubr.bf16.vlgmr.msra.gmra.mrb[0].mxu0 %v683_v32 }
  0x24   :  { %383 = vmatmul.mubr.bf16.vlgmr.msra.gmra.mrb[0].mxu1 %v686_v35  ;;  %630 = vmatpush3.bf16.msra.mxu0 %v689_v37 }
  0x25   :  { %631 = vmatprep.subr.bf16.mxu0 %v697_v34  ;;  %645 = vmatprep.mubr.msk.bf16.mxu0 %vm698_vm0, %v697_v34 }
  0x28   :  { %632 = vmatpush3.bf16.msra.mxu0 %v690_v38 }
  0x29   :  { %633 = vmatprep.subr.bf16.mxu0 %v697_v34 }
  0x2c   :  { %634 = vmatpush3.bf16.msra.mxu0 %v691_v39 }
  0x2d   :  { %635 = vmatprep.subr.bf16.mxu0 %v697_v34 }
  0x30   :  { %636 = vmatpush3.bf16.msra.mxu0 %v692_v40 }
  0x31   :  { %637 = vmatprep.subr.bf16.mxu0 %v697_v34 }
  0x34   :  { %638 = vmatpush3.bf16.msra.mxu0 %v693_v41 }
  0x35   :  { %639 = vmatprep.subr.bf16.mxu0 %v697_v34 }
  0x38   :  { %640 = vmatpush3.bf16.msra.mxu0 %v694_v42 }
  0x39   :  { %641 = vmatprep.subr.bf16.mxu0 %v697_v34 }
  0x3c   :  { %642 = vmatpush3.bf16.msra.mxu0 %v695_v43 }
  0x3d   :  { %643 = vmatprep.subr.bf16.mxu0 %v697_v34 }
  0x40   :  { %644 = vmatpush3.bf16.msra.mxu0 %v696_v44 }
  0xf6   :  { %v592_v45 = vpop.f32.mrb[0].mxu0 }
  0xf7   :  { %v614_v46 = vpop.f32.mrb[0].mxu1  ;;  %v593_v47 = vpop.f32.mrb[1].mxu0 }
  0xf8   :  { %v594_v48 = vadd.f32 %v593_v47, %v592_v45  ;;  %v615_v49 = vpop.f32.mrb[1].mxu1  ;;  %v595_v50 = vpop.f32.mrb[2].mxu0 }
  0xf9   :  { %v616_v51 = vadd.f32 %v615_v49, %v614_v46  ;;  %v617_v52 = vpop.f32.mrb[2].mxu1  ;;  %v596_v53 = vpop.f32.mrb[3].mxu0 }
  0xfa   :  { %v597_v55 = vadd.f32 %v596_v53, %v595_v50  ;;  %v618_v56 = vpop.f32.mrb[3].mxu1 }
  0xfb   :  { %v385_v57 = vadd.f32 %v616_v51, %v594_v48  ;;  %v619_v58 = vadd.f32 %v618_v56, %v617_v52 }
  0xfd   :  { %v407_v59 = vadd.f32 %v566_v54, %v385_v57  ;;  %v388_v60 = vadd.f32 %v619_v58, %v597_v55 }
  0xff   :  { %v408_v61 = vadd.f32 %v566_v54, %v388_v60  ;;  %v409_v62 = vmax.f32 %v407_v59, 0.0 }
 0x101   :  { %v410_v63 = vmax.f32 %v408_v61, 0.0 }
 0x103   :  { %v411_v0 = vpack.c.bf16 %v410_v63, %v409_v62 }
 0x105   :  { %646 = vmatmul.mubr.bf16.vlgmr.msra.gmra.mrb[4].mxu0 %v411_v0 }
 0x1d8   :  { %v517_v2 = vpop.f32.mrb[4].mxu0 }
 0x1d9   :  { %v518_v3 = vadd.f32 %v567_v1, %v517_v2  ;;  %v647_v4 = vpop.f32.mrb[5].mxu0 }
 0x1da   :  { %v520_v5 = vpop.f32.mrb[6].mxu0 }
 0x1db   :  { %524 = vst [vmem:[%s878_s5] sm:$0xff] %v518_v3  ;;  %v521_v6 = vadd.f32 %v567_v1, %v520_v5  ;;  %v648_v7 = vpop.f32.mrb[7].mxu0 }
 0x1dd   :  { %525 = vst [vmem:[%s878_s5 + $0x8] sm:$0xff] %v521_v6 }

</bundles_post_ra>
